<compile_context>
chip_gen: v7x
topology: tpu7x:2x2x1
jax: 0.10.0
libtpu: 0.0.40
codegen_flags: <defaults>
</compile_context>

<pallas_src>
import functools

import jax
import jax.numpy as jnp
from jax import lax
from jax.experimental import pallas as pl
from jax.experimental.pallas import tpu as pltpu

_LOG2E = 1.4426950408889634          # log2(e), folded into the Q pre-scale
_NEG_BIG = -1e30                      # finite "minus infinity" for masking
_M_INIT = float(jnp.finfo(jnp.float32).min)


def _attn_kernel(scale_ref, q_ref, k_ref, v_ref, *rest, has_mask, kv_valid):
    """One (b, h, q_tile, kv_tile) step of online-softmax attention.

    grid = (B, H, q_tiles, kv_tiles); kv is the innermost 'arbitrary' axis.
    Scratch: q_sc (tq,D) pre-scaled Q, m/l (tq,1) running max/sum (log2 domain),
    acc (tq,D) f32 output accumulator.
    """
    if has_mask:
        mask_ref = rest[0]
        o_ref, q_sc, m_sc, l_sc, acc_sc = rest[1:]
    else:
        mask_ref = None
        o_ref, q_sc, m_sc, l_sc, acc_sc = rest

    kv_idx = pl.program_id(3)

    @pl.when(kv_idx == 0)
    def _init():
        # Fold (1/scaling_factor) * log2(e) into Q once per q-tile.
        combined = _LOG2E / scale_ref[0]
        q_sc[...] = (q_ref[0, 0].astype(jnp.float32) * combined).astype(q_sc.dtype)
        m_sc[...] = jnp.full_like(m_sc, _M_INIT)
        l_sc[...] = jnp.zeros_like(l_sc)
        acc_sc[...] = jnp.zeros_like(acc_sc)

    k = k_ref[0, 0]                                      # (tk, D)
    v = v_ref[0, 0]                                      # (tk, D)

    # Q @ K^T as a last-dim contraction (no materialized transpose), f32 acc.
    # Scores are already in the log2 domain (log2(e)/scale folded into Q).
    s = lax.dot_general(q_sc[...], k, (((1,), (1,)), ((), ())),
                        preferred_element_type=jnp.float32)          # (tq, tk)

    if has_mask:
        # Single select per score element (int8 mask, True = keep).
        s = jnp.where(mask_ref[0, 0] != 0, s, _NEG_BIG)
    if kv_valid is not None:
        # Mask out padded key columns (Sk was padded up to a tile multiple).
        tk = k.shape[0]
        col = kv_idx * tk + lax.broadcasted_iota(jnp.int32, s.shape, 1)
        s = jnp.where(col < kv_valid, s, _NEG_BIG)

    # Online softmax update (exp2 form).  If a whole tile is masked for some
    # rows, p is ~uniform for those rows; a later unmasked tile drives alpha->0,
    # which is what makes this correct for causal / padding masks.
    m_prev = m_sc[...]
    m_new = jnp.maximum(m_prev, jnp.max(s, axis=-1, keepdims=True))
    alpha = jnp.exp2(m_prev - m_new)
    p = jnp.exp2(s - m_new)                                          # (tq, tk) f32
    l_sc[...] = alpha * l_sc[...] + jnp.sum(p, axis=-1, keepdims=True)
    acc_sc[...] = alpha * acc_sc[...] + jnp.dot(
        p.astype(v.dtype), v, preferred_element_type=jnp.float32)
    m_sc[...] = m_new

    @pl.when(kv_idx == pl.num_programs(3) - 1)
    def _finalize():
        o_ref[0, 0] = (acc_sc[...] *
                       pl.reciprocal(l_sc[...], approx=False)).astype(o_ref.dtype)


def _tile_and_pad(size, target, align):
    """Return (tile, padded_size).  Full dim if it fits in one tile, otherwise
    an `align`-aligned tile with the dim padded up to a tile multiple."""
    if size <= target:
        return size, size
    tile = max(align, (target // align) * align)
    padded = -(-size // tile) * tile
    return tile, padded


def scaled_dot_product_attention(queries, keys, values, scaling_factor, mask=None,
                                 *, q_tile=256, kv_tile=512):
    """queries: (B,H,Sq,D); keys/values: (B,H,Sk,D); scaling_factor: scalar;
    mask: optional boolean broadcastable to (B,H,Sq,Sk) (True = keep)."""
    B, H, Sq, D = queries.shape
    Sk = keys.shape[2]
    assert keys.shape == (B, H, Sk, D) and values.shape == (B, H, Sk, D)

    tq, sq_pad = _tile_and_pad(Sq, q_tile, 8)      # q-tile: sublane aligned
    tk, sk_pad = _tile_and_pad(Sk, kv_tile, 128)   # kv-tile: lane aligned
    pad_q, pad_k = sq_pad - Sq, sk_pad - Sk

    if pad_q or pad_k:
        queries = jnp.pad(queries, ((0, 0), (0, 0), (0, pad_q), (0, 0)))
        keys = jnp.pad(keys, ((0, 0), (0, 0), (0, pad_k), (0, 0)))
        values = jnp.pad(values, ((0, 0), (0, 0), (0, pad_k), (0, 0)))

    grid = (B, H, sq_pad // tq, sk_pad // tk)
    scale = jnp.asarray(scaling_factor, jnp.float32).reshape((1,))

    q_spec = pl.BlockSpec((1, 1, tq, D), lambda b, h, qi, ki: (b, h, qi, 0))
    kv_spec = pl.BlockSpec((1, 1, tk, D), lambda b, h, qi, ki: (b, h, ki, 0))
    o_spec = pl.BlockSpec((1, 1, tq, D), lambda b, h, qi, ki: (b, h, qi, 0))

    in_specs = [pl.BlockSpec(memory_space=pltpu.MemorySpace.SMEM),  # scale (1,)
                q_spec, kv_spec, kv_spec]
    args = [scale, queries, keys, values]

    has_mask = mask is not None
    # If keys were padded and there is no user mask, mask padded columns in-kernel.
    kv_valid = Sk if (pad_k and not has_mask) else None

    if has_mask:
        mask = jnp.asarray(mask)
        while mask.ndim < 4:
            mask = mask[None]
        bm, hm = mask.shape[0], mask.shape[1]
        if bm not in (1, B) or hm not in (1, H):
            raise ValueError(
                f"mask leading dims {mask.shape[:2]} not broadcastable to {(B, H)}")
        # Broadcast only the trailing (Sq, Sk) dims; keep broadcast batch/head
        # dims at size 1 so we never DMA B*H duplicated copies of the mask.
        mask = jnp.broadcast_to(mask, (bm, hm, Sq, Sk)).astype(jnp.int8)
        if pad_q or pad_k:
            # Padded key columns -> False (masked); padded query rows discarded.
            mask = jnp.pad(mask, ((0, 0), (0, 0), (0, pad_q), (0, pad_k)))

        def mask_index(b, h, qi, ki, _bm=bm, _hm=hm):
            return (b if _bm > 1 else 0, h if _hm > 1 else 0, qi, ki)

        in_specs.append(pl.BlockSpec((1, 1, tq, tk), mask_index))
        args.append(mask)

    # TODO(synk): for known-causal masks, skip above-diagonal kv tiles entirely
    # (per-q-tile kv upper bound via scalar prefetch) instead of streaming a mask.
    kernel = functools.partial(_attn_kernel, has_mask=has_mask, kv_valid=kv_valid)

    out = pl.pallas_call(
        kernel,
        out_shape=jax.ShapeDtypeStruct((B, H, sq_pad, D), queries.dtype),
        grid=grid,
        in_specs=in_specs,
        out_specs=o_spec,
        scratch_shapes=[
            pltpu.VMEM((tq, D), queries.dtype),  # pre-scaled Q (log2e folded)
            pltpu.VMEM((tq, 1), jnp.float32),    # running max (log2 domain)
            pltpu.VMEM((tq, 1), jnp.float32),    # running sum
            pltpu.VMEM((tq, D), jnp.float32),    # f32 output accumulator
        ],
        compiler_params=pltpu.CompilerParams(
            dimension_semantics=("parallel", "parallel", "parallel", "arbitrary"),
            vmem_limit_bytes=48 * 1024 * 1024),  # headroom under v7x's 64 MiB
    )(*args)

    if pad_q:
        out = out[:, :, :Sq, :]
    return out


def _reference(queries, keys, values, scaling_factor, mask=None):
    qv = jnp.matmul(queries, jnp.swapaxes(keys, -2, -1)) / scaling_factor
    if mask is not None:
        qv = jnp.where(mask, qv, -jnp.inf)
    return jnp.matmul(jax.nn.softmax(qv, axis=-1), values)


def _check(out, ref, atol, tag):
    err = float(jnp.max(jnp.abs(out - ref)))
    assert jnp.allclose(out, ref, atol=atol, rtol=atol), f"{tag}: max abs err {err}"


if __name__ == "__main__":
    key = jax.random.PRNGKey(0)
    kq, kk, kv_, kq2, kk2, kv2, kq3, kk3, kv3, km = jax.random.split(key, 10)

    # Small test (module-sized shapes): B=2, H=2, S=8, D=32, causal mask.
    B, H, S, D = 2, 2, 8, 32
    q = jax.random.normal(kq, (B, H, S, D), jnp.float32)
    k = jax.random.normal(kk, (B, H, S, D), jnp.float32)
    v = jax.random.normal(kv_, (B, H, S, D), jnp.float32)
    scale = jnp.sqrt(jnp.float32(D))
    causal = jnp.tril(jnp.ones((S, S), dtype=bool))[None, None]

    out = jax.block_until_ready(
        scaled_dot_product_attention(q, k, v, scale, mask=causal))
    _check(out, _reference(q, k, v, scale, mask=causal), 5e-5, "small-causal")

    # mask=None path.
    out2 = jax.block_until_ready(scaled_dot_product_attention(q, k, v, scale))
    _check(out2, _reference(q, k, v, scale), 5e-5, "small-nomask")

    # Medium test exercising the multi-tile online-softmax (kv reduction) path.
    B2, H2, S2, D2 = 1, 2, 256, 64
    q2 = jax.random.normal(kq2, (B2, H2, S2, D2), jnp.float32)
    k2 = jax.random.normal(kk2, (B2, H2, S2, D2), jnp.float32)
    v2 = jax.random.normal(kv2, (B2, H2, S2, D2), jnp.float32)
    scale2 = jnp.sqrt(jnp.float32(D2))
    causal2 = jnp.tril(jnp.ones((S2, S2), dtype=bool))[None, None]
    out3 = jax.block_until_ready(
        scaled_dot_product_attention(q2, k2, v2, scale2, mask=causal2,
                                     q_tile=128, kv_tile=128))
    _check(out3, _reference(q2, k2, v2, scale2, mask=causal2), 1e-4, "medium-causal")

    # Ragged test: non-tile-multiple Sq/Sk exercises the padding paths.
    B3, H3, Sq3, Sk3, D3 = 2, 2, 160, 200, 64
    q3 = jax.random.normal(kq3, (B3, H3, Sq3, D3), jnp.float32)
    k3 = jax.random.normal(kk3, (B3, H3, Sk3, D3), jnp.float32)
    v3 = jax.random.normal(kv3, (B3, H3, Sk3, D3), jnp.float32)
    scale3 = jnp.sqrt(jnp.float32(D3))

    # (a) no mask -> in-kernel padded-key masking via iota < Sk.
    out4 = jax.block_until_ready(
        scaled_dot_product_attention(q3, k3, v3, scale3,
                                     q_tile=128, kv_tile=128))
    _check(out4, _reference(q3, k3, v3, scale3), 1e-4, "ragged-nomask")

    # (b) broadcast-head random mask (every row keeps at least one key).
    m3 = jax.random.bernoulli(km, 0.7, (B3, 1, Sq3, Sk3))
    m3 = m3.at[..., 0].set(True)
    out5 = jax.block_until_ready(
        scaled_dot_product_attention(q3, k3, v3, scale3, mask=m3,
                                     q_tile=128, kv_tile=128))
    _check(out5, _reference(q3, k3, v3, scale3, mask=m3), 1e-4, "ragged-mask")

    print("KERNEL_OK")
</pallas_src>

<mosaic_0001>
module attributes {stable_mosaic.version = 11 : i64} {
  func.func @_attn_kernel(%arg0: i32, %arg1: i32, %arg2: i32, %arg3: i32, %arg4: memref<1xf32, #tpu.memory_space<smem>>, %arg5: memref<1x1x8x32xf32, #tpu.memory_space<vmem>>, %arg6: memref<1x1x8x32xf32, #tpu.memory_space<vmem>>, %arg7: memref<1x1x8x32xf32, #tpu.memory_space<vmem>>, %arg8: memref<1x1x8x8xi8, #tpu.memory_space<vmem>>, %arg9: memref<1x1x8x32xf32, #tpu.memory_space<vmem>>, %arg10: memref<8x32xf32, #tpu.memory_space<vmem>>, %arg11: memref<8x1xf32, #tpu.memory_space<vmem>>, %arg12: memref<8x1xf32, #tpu.memory_space<vmem>>, %arg13: memref<8x32xf32, #tpu.memory_space<vmem>>) attributes {dimension_semantics = [#tpu.dimension_semantics<parallel>, #tpu.dimension_semantics<parallel>, #tpu.dimension_semantics<parallel>, #tpu.dimension_semantics<arbitrary>], iteration_bounds = array<i64: 2, 2, 1, 1>, scalar_prefetch = 0 : i64, scratch_operands = 4 : i64, tpu.core_type = #tpu.core_type<tc>, window_params = [{transform_indices = @transform_0, window_bounds = array<i64: 1>}, {transform_indices = @transform_1, window_bounds = array<i64: 1, 1, 8, 32>}, {transform_indices = @transform_2, window_bounds = array<i64: 1, 1, 8, 32>}, {transform_indices = @transform_3, window_bounds = array<i64: 1, 1, 8, 32>}, {transform_indices = @transform_4, window_bounds = array<i64: 1, 1, 8, 8>}, {transform_indices = @transform_5, window_bounds = array<i64: 1, 1, 8, 32>}]} {
    %c0_i32 = arith.constant 0 : i32
    %0 = arith.cmpi eq, %arg3, %c0_i32 : i32
    %1 = arith.extui %0 : i1 to i32
    %c0_i32_0 = arith.constant 0 : i32
    %2 = arith.cmpi ne, %1, %c0_i32_0 : i32
    scf.if %2 {
      %c0_32 = arith.constant 0 : index
      %40 = memref.load %arg4[%c0_32] : memref<1xf32, #tpu.memory_space<smem>>
      %cst_33 = arith.constant 1.44269502 : f32
      %41 = arith.divf %cst_33, %40 : f32
      %c0_34 = arith.constant 0 : index
      %c0_35 = arith.constant 0 : index
      %c0_36 = arith.constant 0 : index
      %c0_37 = arith.constant 0 : index
      %42 = vector.load %arg5[%c0_34, %c0_35, %c0_36, %c0_37] : memref<1x1x8x32xf32, #tpu.memory_space<vmem>>, vector<1x1x8x32xf32>
      %43 = vector.shape_cast %42 : vector<1x1x8x32xf32> to vector<8x32xf32>
      %44 = vector.broadcast %41 : f32 to vector<8x32xf32>
      %45 = arith.mulf %43, %44 : vector<8x32xf32>
      %c0_38 = arith.constant 0 : index
      %c0_39 = arith.constant 0 : index
      %46 = vector.load %arg10[%c0_38, %c0_39] : memref<8x32xf32, #tpu.memory_space<vmem>>, vector<8x32xf32>
      tpu.vector_store %arg10[%c0_38, %c0_39], %45 {strides = array<i32>} : memref<8x32xf32, #tpu.memory_space<vmem>>, vector<8x32xf32>,
      %cst_40 = arith.constant -3.40282347E+38 : f32
      %47 = vector.broadcast %cst_40 : f32 to vector<8x1xf32>
      %c0_41 = arith.constant 0 : index
      %c0_42 = arith.constant 0 : index
      %48 = vector.load %arg11[%c0_41, %c0_42] : memref<8x1xf32, #tpu.memory_space<vmem>>, vector<8x1xf32>
      tpu.vector_store %arg11[%c0_41, %c0_42], %47 {strides = array<i32>} : memref<8x1xf32, #tpu.memory_space<vmem>>, vector<8x1xf32>,
      %cst_43 = arith.constant 0.000000e+00 : f32
      %49 = vector.broadcast %cst_43 : f32 to vector<8x1xf32>
      %c0_44 = arith.constant 0 : index
      %c0_45 = arith.constant 0 : index
      %50 = vector.load %arg12[%c0_44, %c0_45] : memref<8x1xf32, #tpu.memory_space<vmem>>, vector<8x1xf32>
      tpu.vector_store %arg12[%c0_44, %c0_45], %49 {strides = array<i32>} : memref<8x1xf32, #tpu.memory_space<vmem>>, vector<8x1xf32>,
      %cst_46 = arith.constant 0.000000e+00 : f32
      %51 = vector.broadcast %cst_46 : f32 to vector<8x32xf32>
      %c0_47 = arith.constant 0 : index
      %c0_48 = arith.constant 0 : index
      %52 = vector.load %arg13[%c0_47, %c0_48] : memref<8x32xf32, #tpu.memory_space<vmem>>, vector<8x32xf32>
      tpu.vector_store %arg13[%c0_47, %c0_48], %51 {strides = array<i32>} : memref<8x32xf32, #tpu.memory_space<vmem>>, vector<8x32xf32>,
    } else {
    }
    %c0 = arith.constant 0 : index
    %c0_1 = arith.constant 0 : index
    %c0_2 = arith.constant 0 : index
    %c0_3 = arith.constant 0 : index
    %3 = vector.load %arg6[%c0, %c0_1, %c0_2, %c0_3] : memref<1x1x8x32xf32, #tpu.memory_space<vmem>>, vector<1x1x8x32xf32>
    %4 = vector.shape_cast %3 : vector<1x1x8x32xf32> to vector<8x32xf32>
    %c0_4 = arith.constant 0 : index
    %c0_5 = arith.constant 0 : index
    %c0_6 = arith.constant 0 : index
    %c0_7 = arith.constant 0 : index
    %5 = vector.load %arg7[%c0_4, %c0_5, %c0_6, %c0_7] : memref<1x1x8x32xf32, #tpu.memory_space<vmem>>, vector<1x1x8x32xf32>
    %6 = vector.shape_cast %5 : vector<1x1x8x32xf32> to vector<8x32xf32>
    %c0_8 = arith.constant 0 : index
    %c0_9 = arith.constant 0 : index
    %7 = vector.load %arg10[%c0_8, %c0_9] : memref<8x32xf32, #tpu.memory_space<vmem>>, vector<8x32xf32>
    %cst = arith.constant dense<0.000000e+00> : vector<8x8xf32>
    %8 = tpu.matmul %7, %4, %cst {dimension_numbers = #tpu.dot_dimension_numbers<[1], [1], [0], [0], [0, 0, 1, 0], [], []>} : vector<8x32xf32>, vector<8x32xf32>, vector<8x8xf32> -> vector<8x8xf32>
    %c0_10 = arith.constant 0 : index
    %c0_11 = arith.constant 0 : index
    %c0_12 = arith.constant 0 : index
    %c0_13 = arith.constant 0 : index
    %9 = vector.load %arg8[%c0_10, %c0_11, %c0_12, %c0_13] : memref<1x1x8x8xi8, #tpu.memory_space<vmem>>, vector<1x1x8x8xi8>
    %10 = vector.shape_cast %9 : vector<1x1x8x8xi8> to vector<8x8xi8>
    %c0_i8 = arith.constant 0 : i8
    %11 = vector.broadcast %c0_i8 : i8 to vector<8x8xi8>
    %12 = arith.cmpi ne, %10, %11 : vector<8x8xi8>
    %cst_14 = arith.constant -1.000000e+30 : f32
    %13 = vector.broadcast %cst_14 : f32 to vector<8x8xf32>
    %14 = arith.select %12, %8, %13 : vector<8x8xi1>, vector<8x8xf32>
    %c0_15 = arith.constant 0 : index
    %c0_16 = arith.constant 0 : index
    %15 = vector.load %arg11[%c0_15, %c0_16] : memref<8x1xf32, #tpu.memory_space<vmem>>, vector<8x1xf32>
    %cst_17 = arith.constant dense<0xFF800000> : vector<8xf32>
    %16 = vector.multi_reduction <maximumf>, %14, %cst_17 [1] : vector<8x8xf32> to vector<8xf32>
    %17 = vector.shape_cast %16 : vector<8xf32> to vector<8x1xf32>
    %18 = arith.maximumf %15, %17 : vector<8x1xf32>
    %19 = arith.subf %15, %18 : vector<8x1xf32>
    %20 = math.exp2 %19 : vector<8x1xf32>
    %21 = vector.broadcast %18 : vector<8x1xf32> to vector<8x8xf32>
    %22 = arith.subf %14, %21 : vector<8x8xf32>
    %23 = math.exp2 %22 : vector<8x8xf32>
    %c0_18 = arith.constant 0 : index
    %c0_19 = arith.constant 0 : index
    %24 = vector.load %arg12[%c0_18, %c0_19] : memref<8x1xf32, #tpu.memory_space<vmem>>, vector<8x1xf32>
    %25 = arith.mulf %20, %24 : vector<8x1xf32>
    %cst_20 = arith.constant dense<0.000000e+00> : vector<8xf32>
    %26 = vector.multi_reduction <add>, %23, %cst_20 [1] : vector<8x8xf32> to vector<8xf32>
    %27 = vector.shape_cast %26 : vector<8xf32> to vector<8x1xf32>
    %28 = arith.addf %25, %27 : vector<8x1xf32>
    %c0_21 = arith.constant 0 : index
    %c0_22 = arith.constant 0 : index
    %29 = vector.load %arg12[%c0_21, %c0_22] : memref<8x1xf32, #tpu.memory_space<vmem>>, vector<8x1xf32>
    tpu.vector_store %arg12[%c0_21, %c0_22], %28 {strides = array<i32>} : memref<8x1xf32, #tpu.memory_space<vmem>>, vector<8x1xf32>,
    %c0_23 = arith.constant 0 : index
    %c0_24 = arith.constant 0 : index
    %30 = vector.load %arg13[%c0_23, %c0_24] : memref<8x32xf32, #tpu.memory_space<vmem>>, vector<8x32xf32>
    %31 = vector.broadcast %20 : vector<8x1xf32> to vector<8x32xf32>
    %32 = arith.mulf %31, %30 : vector<8x32xf32>
    %cst_25 = arith.constant dense<0.000000e+00> : vector<8x32xf32>
    %33 = tpu.matmul %23, %6, %cst_25 {dimension_numbers = #tpu.dot_dimension_numbers<[1], [0], [0], [1], [0, 0, 1, 1], [], []>} : vector<8x8xf32>, vector<8x32xf32>, vector<8x32xf32> -> vector<8x32xf32>
    %34 = arith.addf %32, %33 : vector<8x32xf32>
    %c0_26 = arith.constant 0 : index
    %c0_27 = arith.constant 0 : index
    %35 = vector.load %arg13[%c0_26, %c0_27] : memref<8x32xf32, #tpu.memory_space<vmem>>, vector<8x32xf32>
    tpu.vector_store %arg13[%c0_26, %c0_27], %34 {strides = array<i32>} : memref<8x32xf32, #tpu.memory_space<vmem>>, vector<8x32xf32>,
    %c0_28 = arith.constant 0 : index
    %c0_29 = arith.constant 0 : index
    %36 = vector.load %arg11[%c0_28, %c0_29] : memref<8x1xf32, #tpu.memory_space<vmem>>, vector<8x1xf32>
    tpu.vector_store %arg11[%c0_28, %c0_29], %18 {strides = array<i32>} : memref<8x1xf32, #tpu.memory_space<vmem>>, vector<8x1xf32>,
    %c0_i32_30 = arith.constant 0 : i32
    %37 = arith.cmpi eq, %arg3, %c0_i32_30 : i32
    %38 = arith.extui %37 : i1 to i32
    %c0_i32_31 = arith.constant 0 : i32
    %39 = arith.cmpi ne, %38, %c0_i32_31 : i32
    scf.if %39 {
      %c0_32 = arith.constant 0 : index
      %c0_33 = arith.constant 0 : index
      %40 = vector.load %arg13[%c0_32, %c0_33] : memref<8x32xf32, #tpu.memory_space<vmem>>, vector<8x32xf32>
      %c0_34 = arith.constant 0 : index
      %c0_35 = arith.constant 0 : index
      %41 = vector.load %arg12[%c0_34, %c0_35] : memref<8x1xf32, #tpu.memory_space<vmem>>, vector<8x1xf32>
      %42 = tpu.reciprocal %41 : vector<8x1xf32> -> vector<8x1xf32>
      %43 = vector.broadcast %42 : vector<8x1xf32> to vector<8x32xf32>
      %44 = arith.mulf %40, %43 : vector<8x32xf32>
      %c0_36 = arith.constant 0 : index
      %c0_37 = arith.constant 0 : index
      %c0_38 = arith.constant 0 : index
      %c0_39 = arith.constant 0 : index
      %45 = vector.load %arg9[%c0_36, %c0_37, %c0_38, %c0_39] : memref<1x1x8x32xf32, #tpu.memory_space<vmem>>, vector<1x1x8x32xf32>
      %46 = vector.shape_cast %45 : vector<1x1x8x32xf32> to vector<8x32xf32>
      %47 = vector.shape_cast %44 : vector<8x32xf32> to vector<1x1x8x32xf32>
      tpu.vector_store %arg9[%c0_36, %c0_37, %c0_38, %c0_39], %47 {strides = array<i32>} : memref<1x1x8x32xf32, #tpu.memory_space<vmem>>, vector<1x1x8x32xf32>,
    } else {
    }
    return
  }
  func.func @transform_0(%arg0: i32, %arg1: i32, %arg2: i32, %arg3: i32) -> i32 {
    %c0_i32 = arith.constant 0 : i32
    %c0_i32_0 = arith.constant 0 : i32
    return %c0_i32 : i32
  }
  func.func @transform_1(%arg0: i32, %arg1: i32, %arg2: i32, %arg3: i32) -> (i32, i32, i32, i32) {
    %c0_i32 = arith.constant 0 : i32
    %c0_i32_0 = arith.constant 0 : i32
    return %arg0, %arg1, %arg2, %c0_i32 : i32, i32, i32, i32
  }
  func.func @transform_2(%arg0: i32, %arg1: i32, %arg2: i32, %arg3: i32) -> (i32, i32, i32, i32) {
    %c0_i32 = arith.constant 0 : i32
    %c0_i32_0 = arith.constant 0 : i32
    return %arg0, %arg1, %arg3, %c0_i32 : i32, i32, i32, i32
  }
  func.func @transform_3(%arg0: i32, %arg1: i32, %arg2: i32, %arg3: i32) -> (i32, i32, i32, i32) {
    %c0_i32 = arith.constant 0 : i32
    %c0_i32_0 = arith.constant 0 : i32
    return %arg0, %arg1, %arg3, %c0_i32 : i32, i32, i32, i32
  }
  func.func @transform_4(%arg0: i32, %arg1: i32, %arg2: i32, %arg3: i32) -> (i32, i32, i32, i32) {
    %c0_i32 = arith.constant 0 : i32
    %c0_i32_0 = arith.constant 0 : i32
    %c0_i32_1 = arith.constant 0 : i32
    return %c0_i32, %c0_i32_0, %arg2, %arg3 : i32, i32, i32, i32
  }
  func.func @transform_5(%arg0: i32, %arg1: i32, %arg2: i32, %arg3: i32) -> (i32, i32, i32, i32) {
    %c0_i32 = arith.constant 0 : i32
    %c0_i32_0 = arith.constant 0 : i32
    return %arg0, %arg1, %arg2, %c0_i32 : i32, i32, i32, i32
  }
}

</mosaic_0001>

<bundles_post_ra>
// kernel: tpu_custom_call.1
= control target key start
LH: loop header
LB: loop body
LE: loop exit
PB: predicated region body
PF: predicated region fallthrough
CT: control target
= control target key end

     0   :  { %s1475_s0 = inlined_call_operand.<no memory space> [shape: f32[1], index: 0, kind: input, shape index: {}]   ;;  %s1476_s1 = inlined_call_operand.hbm [shape: f32[2,2,8,32], index: 1, kind: input, shape index: {}]   ;;  %s1477_s2 = inlined_call_operand.hbm [shape: f32[2,2,8,32], index: 2, kind: input, shape index: {}]   ;;  %s1478_s3 = inlined_call_operand.hbm [shape: f32[2,2,8,32], index: 3, kind: input, shape index: {}]   ;;  %s1479_s4 = inlined_call_operand.vmem [shape: s8[1,1,8,8], index: 4, kind: input, shape index: {}]   ;;  %s1480_s5 = inlined_call_operand.hbm [shape: f32[2,2,8,32], index: 5, kind: output, shape index: {}]  }
   0x1   :  { %1491 = sst [smem:[#allocation24_spill]] %s1477_s2 }
   0x2   :  { %10 = sst [smem:[#allocation6]] %s1475_s0 }
   0x3   :  { %11 = vsyncpa [#allocation8], 0 }
   0x4   :  { %13 = vsyncpa [#allocation8 + $0x1], 0 }
   0x5   :  { %14 = vsyncpa [#allocation11], 0 }
   0x6   :  { %16 = vsyncpa [#allocation11 + $0x1], 0 }
   0x7   :  { %17 = vsyncpa [#allocation9], 0 }
   0x8   :  { %19 = vsyncpa [#allocation9 + $0x1], 0  ;;  %s1173_s20 = smov 0   ;;  %s1175_s21 = smov 0  }
   0x9   :  { %s1177_s22 = smov 0   ;;  %s1179_s23 = smov 0  }
   0xa   :  { %s1181_s24 = smov 0   ;;  %s1183_s25 = smov 0  }
   0xb   :  { %s1185_s26 = smov 0   ;;  %s1187_s0 = smov 0  }
   0xc LB: > { %1492 = sst [smem:[#allocation17_spill]] %s1102_s20  ;;  %s1214_s27 = sadd.s32 4294967295, %s1130_s0   ;;  %s1130_s0 = sphi %s1187_s0, %s25_s0   ;;  %s1126_s26 = sphi %s1185_s26, %s1521_s26   ;;  %s1122_s25 = sphi %s1183_s25, %s1520_s25   ;;  %s1118_s24 = sphi %s1181_s24, %s1519_s24   ;;  %s1114_s23 = sphi %s1179_s23, %s1518_s23   ;;  %s1110_s22 = sphi %s1177_s22, %s1524_s22   ;;  %s1106_s21 = sphi %s1175_s21, %s1523_s21   ;;  %s1102_s20 = sphi %s1173_s20, %s1522_s20  }
   0xd   : > { %1493 = sst [smem:[#allocation18_spill]] %s1122_s25  ;;  %s794_s28 = sadd.s32 4294967294, %s1130_s0  }
   0xe   : > { %1494 = sst [smem:[#allocation19_spill]] %s1126_s26  ;;  %s47_s29 = sadd.s32 1, %s1122_s25 }
   0xf   : > { %s51_s30 = sadd.s32 1, %s1126_s26  ;;  %p49_p0 = scmp.ge.s32.totalorder %s47_s29, 2 }
  0x10   : > { %s83_s6 = sadd.s32 1, %s1110_s22  ;;  %p90_p1 = scmp.ne.s32.totalorder %s1110_s22, %s1106_s21 }
  0x11   : > { %p91_p2 = scmp.eq.s32.totalorder %s1130_s0, 0  ;;  %s1526_s29 = smov (%p49_p0, %s47_s29), 0 }
  0x12   : > { %1495 = sst [smem:[#allocation20_spill]] %s1526_s29  ;;  %s1528_s30 = smov (!%p49_p0, %s51_s30), %s1126_s26 }
  0x13   : > { %s77_s7 = ssub.s32 %s1122_s25, %s1526_s29  ;;  %p1228_p3 = por %p91_p2, %p90_p1 }
  0x14   : > { %p53_p4 = scmp.ge.s32.totalorder %s1528_s30, 2  ;;  %p96_p5 = scmp.ne.s32.totalorder %s1106_s21, %s1102_s20 }
  0x15   : > { %p97_p6 = scmp.eq.s32.totalorder %s1214_s27, 0  ;;  %p212_p7 = scmp.eq.s32.totalorder %s1214_s27, 3 }
  0x16   : > { %s1530_s30 = smov (%p53_p4, %s1528_s30), 0  ;;  %p218_p10 = scmp.eq.s32.totalorder %s794_s28, 3 }
  0x17   : > { %1497 = sst [smem:[#allocation21_spill]] %s1530_s30  ;;  %p1238_p8 = por %p97_p6, %p96_p5 }
  0x18   : > { %p1242_p9 = por %p212_p7, %p90_p1  ;;  %s76_s11 = ssub.s32 %s1126_s26, %s1530_s30 }
  0x19   : > { %s1498_s9 = scalar_select %p1238_p8, 1, 0 }
  0x1a   : > { %s1499_s10 = scalar_select %p1242_p9, 1, 0 }
  0x1b   : > { %s78_s12 = sor.u32 %s77_s7, %s76_s11  ;;  %p1248_p12 = por %p218_p10, %p96_p5 }
  0x1c   : > { %p81_p11 = scmp.eq.s32.totalorder %s78_s12, 0  ;;  %p858_p13 = scmp.lt.s32.totalorder %s1130_s0, 4 }
  0x1d   : > { %s1500_s13 = scalar_select %p1248_p12, 1, 0 }
  0x1e   : > { %s1481_s14 = sand.u32 1, %s1110_s22   ;;  %s799_s17 = sshll.u32 %s1126_s26, 1 }
  0x1f   : > { %1501 = sst [smem:[#allocation22_spill]] %s1500_s13  ;;  %s1259_s16 = sshll.u32 %s1481_s14, 3 }
  0x20   : > { %s1255_s15 = scalar_select %p81_p11, %s1110_s22, %s83_s6  }
  0x21   : > { %s261_s18 = sadd.s32 %s1122_s25, %s799_s17  ;;  %p1265_p0 = pnand %p858_p13, %p1228_p3 }
  0x22   : > { %1502 = sst [smem:[#allocation23_spill]] %s1255_s15  ;;  %s1269_s28 = sshll.u32 %s261_s18, 7 }
  0x23   : > { %s1503_s19 = scalar_select %p1265_p0, 1, 0 }
  0x24   : > { %s272_s7 = sand.u32 1, %s1130_s0   ;;  %s1504_s2 = sld [smem:[#allocation24_spill]] }
  0x25   : > { %s276_s17 = scalar_lea.vmem [#allocation10], %s1259_s16  ;;  %s1283_s14 = scalar_lea.sflag [#allocation11], %s272_s7 }
  0x26   : > { %s286_s8 = sshll.u32 %s276_s17, 4  ;;  %p1289_p4 = pneg %p1265_p0  ;;  %s1280_s8 = int_to_ptr.vmem [resolvable:$true] %s286_s8 }
  0x2a   : > { %s1276_s6 = scalar_lea.hbm %s1504_s2, %s1269_s28  ;;  %s943_s17 = scalar_lea.hbm %s1504_s2, 512 }
  0x2b   : > { %s938_s18 = scalar_lea.hbm %s1276_s6, 128  ;;  %p944_p7 = scmp.lt.u32.totalorder %s1276_s6, %s1504_s2 }
  0x2c   : > { %p939_p3 = scmp.ne.s32.totalorder %s1276_s6, %s938_s18  ;;  %p945_p10 = scmp.lt.u32.totalorder %s943_s17, %s938_s18 }
  0x2d   : > { %p947_p13 = scmp.lt.u32.totalorder %s938_s18, %s1276_s6 }
  0x2e   : > { %p941_p5 = pnand %p1289_p4, %p939_p3  ;;  %p946_p11 = por %p945_p10, %p944_p7 }
  0x30   : > { %p942_p6 = pneg %p941_p5  ;;  %p948_p1 = por %p947_p13, %p946_p11 }
  0x32   : > { %p949_p2 = pnand %p948_p1, %p942_p6 }
  0x34   : > { %952 = shalt.err (!%p949_p2)
}
  0x35   : > { %s953_s7 = scalar_lea.vmem %s1280_s8, 128  ;;  %s1132_s11 = smov [#allocation10]  }
  0x36   : > { %p954_p3 = scmp.ne.s32.totalorder %s1280_s8, %s953_s7  ;;  %s958_s12 = sshll.u32 %s1132_s11, 4  ;;  %s959_s12 = int_to_ptr.vmem [resolvable:$false] %s958_s12 }
  0x37   : > { %s960_s26 = scalar_lea.vmem %s959_s12, 256  ;;  %p961_p9 = scmp.lt.s32.totalorder %s1280_s8, %s959_s12 }
  0x38   : > { %p956_p5 = pnand %p954_p3, %p1289_p4  ;;  %p962_p8 = scmp.lt.s32.totalorder %s960_s26, %s953_s7 }
  0x3a   : > { %p957_p12 = pneg %p956_p5  ;;  %p963_p7 = por %p962_p8, %p961_p9 }
  0x3c   : > { %p964_p10 = pnand %p963_p7, %p957_p12 }
  0x3e   : > { %967 = shalt.err (!%p964_p10)
}
  0x3f   : > { %850 = dma.hbm_to_vmem [thread:$0]  (!%p1265_p0), %s1276_s6, 128, %s1280_s8, %s1283_s14  }
  0x40   : > { %p1506_p1 = scmp.lt.s32.totalorder %s1130_s0, 5  ;;  %p1507_p2 = scmp.ge.s32.totalorder %s1130_s0, 1 }
  0x41   : > { %s1325_s7 = scalar_lea.hbm %s1476_s1, %s1269_s28  ;;  %s255_s11 = scalar_lea.vmem [#allocation7], %s1259_s16 }
  0x42   : > { %p1317_p6 = pnand %p1507_p2, %p1506_p1  ;;  %s265_s12 = sshll.u32 %s255_s11, 4  ;;  %s1328_s12 = int_to_ptr.vmem [resolvable:$true] %s265_s12 }
  0x43   : > { %s1334_s26 = scalar_lea.hbm %s1478_s3, %s1269_s28  ;;  %s1509_s2 = sand.u32 1, %s1110_s22  }
  0x44   : > { %s1508_s29 = scalar_select %p1317_p6, 1, 0 }
  0x45   : > { %s252_s25 = scalar_lea.sflag [#allocation8], %s1509_s2  ;;  %s968_s15 = scalar_lea.hbm %s1325_s7, 128 }
  0x46   : > { %p969_p8 = scmp.ne.s32.totalorder %s1325_s7, %s968_s15  ;;  %s973_s13 = scalar_lea.hbm %s1476_s1, 512 }
  0x47   : > { %p974_p11 = scmp.lt.u32.totalorder %s1325_s7, %s1476_s1  ;;  %p975_p13 = scmp.lt.u32.totalorder %s973_s13, %s968_s15 }
  0x48   : > { %p971_p9 = pnand %p969_p8, %p1289_p4  ;;  %p977_p5 = scmp.lt.u32.totalorder %s968_s15, %s1325_s7 }
  0x49   : > { %p976_p3 = por %p975_p13, %p974_p11 }
  0x4a   : > { %p972_p12 = pneg %p971_p9 }
  0x4b   : > { %p978_p7 = por %p977_p5, %p976_p3 }
  0x4d   : > { %p979_p10 = pnand %p978_p7, %p972_p12 }
  0x4f   : > { %982 = shalt.err (!%p979_p10)
}
  0x50   : > { %s983_s2 = scalar_lea.vmem %s1328_s12, 128  ;;  %s1133_s28 = smov [#allocation7]  }
  0x51   : > { %p984_p1 = scmp.ne.s32.totalorder %s1328_s12, %s983_s2  ;;  %s988_s6 = sshll.u32 %s1133_s28, 4  ;;  %s989_s6 = int_to_ptr.vmem [resolvable:$false] %s988_s6 }
  0x52   : > { %s990_s20 = scalar_lea.vmem %s989_s6, 256  ;;  %p991_p9 = scmp.lt.s32.totalorder %s1328_s12, %s989_s6 }
  0x53   : > { %p986_p2 = pnand %p984_p1, %p1289_p4  ;;  %p992_p6 = scmp.lt.s32.totalorder %s990_s20, %s983_s2 }
  0x55   : > { %p987_p8 = pneg %p986_p2  ;;  %p993_p11 = por %p992_p6, %p991_p9 }
  0x57   : > { %p994_p13 = pnand %p993_p11, %p987_p8 }
  0x59   : > { %997 = shalt.err (!%p994_p13)
}
  0x5a   : > { %847 = dma.hbm_to_vmem [thread:$0]  (!%p1265_p0), %s1325_s7, 128, %s1328_s12, %s252_s25  }
  0x5b   : > { %s297_s13 = scalar_lea.vmem [#allocation12], %s1259_s16  ;;  %s998_s8 = scalar_lea.hbm %s1334_s26, 128 }
  0x5c   : > { %s307_s15 = sshll.u32 %s297_s13, 4  ;;  %p999_p12 = scmp.ne.s32.totalorder %s1334_s26, %s998_s8  ;;  %s308_s15 = int_to_ptr.vmem [resolvable:$true] %s307_s15 }
  0x5d   : > { %s1003_s11 = scalar_lea.hbm %s1478_s3, 512  ;;  %p1004_p5 = scmp.lt.u32.totalorder %s1334_s26, %s1478_s3 }
  0x5e   : > { %p1001_p6 = pnand %p999_p12, %p1289_p4  ;;  %p1005_p7 = scmp.lt.u32.totalorder %s1003_s11, %s998_s8 }
  0x5f   : > { %p1007_p1 = scmp.lt.u32.totalorder %s998_s8, %s1334_s26 }
  0x60   : > { %p1002_p3 = pneg %p1001_p6  ;;  %p1006_p10 = por %p1005_p7, %p1004_p5 }
  0x62   : > { %p1008_p2 = por %p1007_p1, %p1006_p10 }
  0x64   : > { %p1009_p8 = pnand %p1008_p2, %p1002_p3 }
  0x66   : > { %1012 = shalt.err (!%p1009_p8)
}
  0x67   : > { %s1013_s25 = scalar_lea.vmem %s308_s15, 128  ;;  %s1134_s16 = smov [#allocation12]  }
  0x68   : > { %p1014_p9 = scmp.ne.s32.totalorder %s308_s15, %s1013_s25  ;;  %s1018_s7 = sshll.u32 %s1134_s16, 4  ;;  %s1019_s7 = int_to_ptr.vmem [resolvable:$false] %s1018_s7 }
  0x69   : > { %s1020_s12 = scalar_lea.vmem %s1019_s7, 256  ;;  %p1021_p12 = scmp.lt.s32.totalorder %s308_s15, %s1019_s7 }
  0x6a   : > { %p1016_p11 = pnand %p1014_p9, %p1289_p4  ;;  %p1022_p6 = scmp.lt.s32.totalorder %s1020_s12, %s1013_s25 }
  0x6c   : > { %p1017_p13 = pneg %p1016_p11  ;;  %p1023_p0 = por %p1022_p6, %p1021_p12 }
  0x6e   : > { %p1024_p5 = pnand %p1023_p0, %p1017_p13 }
  0x70   : > { %1027 = shalt.err (!%p1024_p5)
}
  0x71   : > { %p1510_p7 = scmp.ne.s32.totalorder %s1503_s19, 0  ;;  %p1511_p3 = scmp.ne.s32.totalorder %s1508_s29, 0 }
  0x72   : > { %s1381_s30 = sand.u32 (!%p1511_p3), 1, %s1106_s21   ;;  %p1512_p0 = scmp.ne.s32.totalorder (!%p1511_p3), %s1498_s9, 0 }
  0x73   : > { %853 = dma.hbm_to_vmem [thread:$0]  (!%p1510_p7), %s1334_s26, 128, %s308_s15, %s1283_s14  }
  0x74   : > { %316 = sbr.rel (%p1511_p3) target bundleno = 1015 (0x3f7), region = 40  ;;  %s1384_s6 = sshll.u32 (!%p1511_p3), %s1381_s30, 3 }
  0x75   : > { %s319_s20 = scalar_lea.sflag (!%p1511_p3), [#allocation8], %s1381_s30  ;;  %s322_s13 = scalar_lea.vmem (!%p1511_p3), [#allocation7], %s1384_s6 }
  0x7b   : > { %1089 = dma.done.wait (%p1512_p0), %s319_s20, 128  }
  0x7c   : > { %1091 = vsyncadd (%p1512_p0), %s319_s20, 4294967168  ;;  %s327_s14 = sand.u32 1, %s1214_s27   ;;  %s331_s29 = scalar_lea.vmem [#allocation10], %s1384_s6 }
  0x7d   : > { %s328_s19 = scalar_lea.sflag [#allocation11], %s327_s14 }
  0x7e   : > { %1093 = dma.done.wait (%p1512_p0), %s328_s19, 256  }
  0x7f   : > { %1095 = vsyncadd (%p1512_p0), %s328_s19, 4294967040  ;;  %vm405_vm0 = vcmask 261120   ;;  %s397_s26 = sld [smem:[#allocation6]]  ;;  %v1135_v0 = vmov 0.0   ;;  %vm1136_vm1 = vmmov 0   ;;  %v411_v2 = vld [vmem:[%s331_s29] sm:$0xff] }
  0x80   : > { %410 = vst.msk [vmem:[#allocation5] sm:$0xff] %vm405_vm0, %v1135_v0  ;;  %824 = vmatprep.subr.mxu0 %v1135_v0  ;;  %826 = vmatprep.mubr.msk.f32.mxu0 %vm1136_vm1, %v1135_v0  ;;  %v402_v4 = vld [vmem:[%s322_s13] sm:$0xff]  ;;  %v1137_v8 = vmov 0   ;;  %vm407_vm2 = vcmask 7168   ;;  %v1138_v9 = vmov -3.4028235e+38  }
  0x81   : > { %829 = vmatprep.subr.mxu1 %v1135_v0  ;;  %831 = vmatprep.mubr.msk.f32.mxu1 %vm1136_vm1, %v1135_v0  ;;  %408 = vst.msk [vmem:[#allocation3] sm:$0xff] %vm407_vm2, %v1138_v9  ;;  %409 = vst.msk [vmem:[#allocation4] sm:$0xff] %vm407_vm2, %v1135_v0  ;;  %v491_v10 = vld [vmem:[%s1479_s4] sm:$0x3]  ;;  %vm498_vm5 = vcmask 64512   ;;  %s340_s18 = scalar_lea.vmem [#allocation12], %s1384_s6 }
  0x82   : > { %825 = vmatpush3.xpose.msk.msra.mxu0 %vm405_vm0, %v411_v2  ;;  %928 = vset.pattern.permute.xlu0 %v1137_v8  ;;  %vm492_vm3 = vnez %v491_v10  ;;  %v412_v21 = vld [vmem:[%s340_s18] sm:$0xff]  ;;  %s816_s17 = sshll.u32 %s1118_s24, 1  ;;  %s383_s28 = scalar_lea.vmem [#allocation13], %s1384_s6 }
  0x83   : > { %929 = vset.pattern.permute.xlu1 %v1137_v8  ;;  %v493_v11 = vsel %vm492_vm3, 16843009, %v1137_v8  ;;  %830 = vmatpush3.msra.mxu1 %v412_v21  ;;  %s629_s11 = sadd.s32 %s1114_s23, %s816_s17  ;;  %s633_s25 = sshll.u32 %s383_s28, 4  ;;  %s1422_s25 = int_to_ptr.vmem [resolvable:$true] %s633_s25 }
  0x84   : > { %v494_v12 = vunpack.c.0.s8 %v493_v11  ;;  %s817_s2 = sshll.u32 %s629_s11, 7  ;;  %s617_s24 = scalar_lea.sflag [#allocation9], %s1381_s30 }
  0x85   : > { %v398_v1 = vstv %s397_s26  ;;  %s1420_s12 = scalar_lea.hbm %s1480_s5, %s817_s2  ;;  %s1028_s23 = scalar_lea.vmem %s1422_s25, 128 }
  0x86   : > { %930 = vrcp.f32 %v398_v1  ;;  %vm495_vm4 = vcmp.ne.s32.totalorder %v494_v12, 0  ;;  %p1029_p4 = scmp.ne.s32.totalorder %s1422_s25, %s1028_s23  ;;  %p1513_p10 = scmp.ne.s32.totalorder %s1499_s10, 0 }
  0x87   : > { %v520_v33 = vld [vmem:[#allocation5] sm:$0xff]  ;;  %s1139_s6 = smov [#allocation13]  }
  0x88   : > { %v497_v17 = vld [vmem:[#allocation3] sm:$0xff]  ;;  %v512_v27 = vld [vmem:[#allocation4] sm:$0xff]  ;;  %p1030_p1 = pnand %p1029_p4, %p1513_p10  ;;  %s1032_s20 = sshll.u32 %s1139_s6, 4  ;;  %s1033_s20 = int_to_ptr.vmem [resolvable:$false] %s1032_s20 }
  0x89   : > { %s1034_s13 = scalar_lea.vmem %s1033_s20, 256  ;;  %p1035_p8 = scmp.lt.s32.totalorder %s1422_s25, %s1033_s20 }
  0x8a   : > { %p1031_p2 = pneg %p1030_p1  ;;  %p1036_p9 = scmp.lt.s32.totalorder %s1034_s13, %s1028_s23 }
  0x8c   : > { %p1037_p11 = por %p1036_p9, %p1035_p8 }
  0x8e   : > { %p1038_p13 = pnand %p1037_p11, %p1031_p2 }
  0x90   : > { %v931_v3 = vpop.eup %930 }
  0x91   : > { %834 = vpush %v931_v3 }
  0xc2   : > { %s835_s27 = spop %834 }
  0xc3   : > { %s401_s9 = smul.f32 1.442695, %s835_s27 }
  0xc5   : > { %v403_v5 = vstv %s401_s9 }
  0xc6   : > { %v404_v6 = vmul.f32 %v403_v5, %v402_v4 }
  0xc8   : > { %406 = vst.msk [vmem:[#allocation2] sm:$0xff] %vm405_vm0, %v404_v6 }
  0xcf   : > { %v413_v7 = vld [vmem:[#allocation2] sm:$0xff] }
  0xd0   : > { %827 = vmatmul.mubr.msk.f32.vlgmr.msra.gmra.mrb[0].mxu0 %vm405_vm0, %v413_v7 }
 0x1a3   : > { %v487_v13 = vpop.f32.mrb[0].mxu0 }
 0x1a4   : > { %v496_v14 = vsel %vm495_vm4, %v487_v13, -1e+30  ;;  %v828_v15 = vpop.f32.mrb[1].mxu0 }
 0x1a5   : > { %v499_v16 = vsel %vm498_vm5, %v496_v14, -inf }
 0x1a6   : > { %500 = vmax.xlane.f32.xlu0 %v499_v16 }
 0x233   : > { %v501_v18 = vpop.xlane.xlu0 %500 }
 0x234   : > { %v502_v19 = vmax.f32 %v497_v17, %v501_v18 }
 0x236   : > { %v503_v20 = vsub.f32 %v497_v17, %v502_v19  ;;  %602 = vst.msk [vmem:[#allocation3] sm:$0xff] %vm407_vm2, %v502_v19  ;;  %507 = vperm.xlu0 %928, %v502_v19  }
 0x2b5   : > { %v508_v22 = vpop.permute.xlu0 %507 }
 0x2b6   : > { %v510_v23 = vsub.f32 %v496_v14, %v508_v22 }
 0x2b8   : > { %932 = vpow2.f32 %v510_v23 }
 0x2b9   : > { %934 = vpow2.f32 %v503_v20 }
 0x2c2   : > { %v933_v24 = vpop.eup %932 }
 0x2c3   : > { %832 = vmatmul.mubr.msk.f32.vlgmr.msra.gmra.mrb[0].mxu1 %vm498_vm5, %v933_v24  ;;  %v514_v25 = vsel %vm498_vm5, %v933_v24, 0.0  ;;  %v935_v26 = vpop.eup %934 }
 0x2c4   : > { %515 = vadd.xlane.f32.xlu1 %v514_v25  ;;  %v513_v28 = vmul.f32 %v935_v26, %v512_v27 }
 0x2d5   : > { %523 = vperm.xlu1 %929, %v935_v26  }
 0x351   : > { %v516_v29 = vpop.xlane.xlu1 %515 }
 0x352   : > { %v517_v30 = vadd.f32 %v516_v29, %v513_v28 }
 0x354   : > { %519 = vst.msk [vmem:[#allocation4] sm:$0xff] %vm407_vm2, %v517_v30 }
 0x355   : > { %v524_v34 = vpop.permute.xlu1 %523 }
 0x356   : > { %v526_v35 = vmul.f32 %v524_v34, %v520_v33 }
 0x35b   : > { %v607_v31 = vld [vmem:[#allocation4] sm:$0xff] }
 0x35c   : > { %936 = vrcp.f32 %v607_v31 }
 0x366   : > { %v937_v32 = vpop.eup %936 }
 0x367   : > { %611 = vperm.xlu1 %929, %v937_v32  }
 0x396   : > { %v596_v36 = vpop.f32.mrb[0].mxu1 }
 0x397   : > { %v600_v37 = vadd.f32 %v596_v36, %v526_v35  ;;  %v833_v38 = vpop.f32.mrb[1].mxu1 }
 0x399   : > { %601 = vst.msk [vmem:[#allocation5] sm:$0xff] %vm405_vm0, %v600_v37 }
 0x3a0   : > { %v606_v39 = vld [vmem:[#allocation5] sm:$0xff] }
 0x3e6   : > { %v612_v40 = vpop.permute.xlu1 %611 }
 0x3e7   : > { %v614_v41 = vmul.f32 %v612_v40, %v606_v39 }
 0x3e9   : > { %615 = vst.msk [vmem:[%s383_s28] sm:$0xff] %vm405_vm0, %v614_v41 }
 0x3ea   : > { %1041 = shalt.err (!%p1038_p13)
}
 0x3eb   : > { %s1042_s30 = scalar_lea.hbm %s1420_s12, 128  ;;  %s1046_s29 = scalar_lea.hbm %s1480_s5, 512 }
 0x3ec   : > { %p1043_p12 = scmp.ne.s32.totalorder %s1420_s12, %s1042_s30  ;;  %p1047_p7 = scmp.lt.u32.totalorder %s1420_s12, %s1480_s5 }
 0x3ed   : > { %p1048_p3 = scmp.lt.u32.totalorder %s1046_s29, %s1042_s30  ;;  %p1050_p4 = scmp.lt.u32.totalorder %s1042_s30, %s1420_s12 }
 0x3ee   : > { %p1044_p6 = pnand %p1043_p12, %p1513_p10 }
 0x3ef   : > { %p1049_p0 = por %p1048_p3, %p1047_p7 }
 0x3f0   : > { %p1045_p5 = pneg %p1044_p6 }
 0x3f1   : > { %p1051_p1 = por %p1050_p4, %p1049_p0 }
 0x3f3   : > { %p1052_p2 = pnand %p1051_p1, %p1045_p5 }
 0x3f5   : > { %1055 = shalt.err (!%p1052_p2)
}
 0x3f6   : > { %842 = dma.vmem_to_hbm [thread:$0]  (%p1513_p10), %s1422_s25, 128, %s1420_s12, %s617_s24  }
 0x3f7 PF: > { %s1514_s9 = sld [smem:[#allocation17_spill]]  ;;  %s1515_s15 = sld [smem:[#allocation22_spill]] }
 0x3f8   : > { %p859_p8 = scmp.ge.s32.totalorder %s1130_s0, 2 }
 0x3fd   : > { %s645_s8 = sand.u32 1, %s1514_s9   ;;  %p1516_p9 = scmp.ne.s32.totalorder %s1515_s15, 0 }
 0x3fe   : > { %s646_s18 = scalar_lea.sflag [#allocation9], %s645_s8 }
 0x3ff   : > { %p855_p11 = pnand %p859_p8, %p1516_p9 }
 0x401   : > { %1097 = dma.done.wait (!%p855_p11), %s646_s18, 128  }
 0x402   : > { %1099 = vsyncadd (!%p855_p11), %s646_s18, 4294967168  ;;  %s25_s0 = sadd.s32 1, %s1130_s0   ;;  %s1517_s10 = sld [smem:[#allocation23_spill]] }
 0x403   : > { %p22_p13 = scmp.ge.s32.totalorder %s25_s0, 6   ;;  %s1518_s23 = sld [smem:[#allocation18_spill]] }
 0x404   : > { %s1519_s24 = sld [smem:[#allocation19_spill]]  ;;  %s1520_s25 = sld [smem:[#allocation20_spill]] }
 0x405   : > { %s1521_s26 = sld [smem:[#allocation21_spill]]  ;;  %s1522_s20 = smov %s1106_s21 }
 0x406   : > { %s1523_s21 = smov %s1110_s22  ;;  %24 = sbr.rel (!%p22_p13) target bundleno = 12 (0xc), region = 120 }
 0x408   : > { %s1524_s22 = smov %s1517_s10 }
 0x40d   :  { %651 = vsyncpa [#allocation8], 1 }
 0x40e   :  { %653 = vsyncpa [#allocation8 + $0x1], 1 }
 0x40f   :  { %654 = vsyncpa [#allocation11], 1 }
 0x410   :  { %656 = vsyncpa [#allocation11 + $0x1], 1 }
 0x411   :  { %657 = vsyncpa [#allocation9], 1 }
 0x412   :  { %659 = vsyncpa [#allocation9 + $0x1], 1 }

</bundles_post_ra>
